<compile_context>
chip_gen: v7x
topology: tpu7x:2x2x1
jax: 0.10.0
libtpu: 0.0.40
codegen_flags: <defaults>
</compile_context>

<pallas_src>
import functools

import jax
import jax.numpy as jnp
from jax.experimental import pallas as pl
from jax.experimental.pallas import tpu as pltpu

EPS = 1e-6
_MIB = 1024 * 1024


def _round_up(x, m):
    return ((x + m - 1) // m) * m


def _vmem_cap_bytes():
    """Physical VMEM capacity; conservative 64 MiB (v7x) fallback."""
    try:
        return int(pltpu.get_tpu_info().vmem_capacity_bytes)
    except Exception:
        return 64 * _MIB


def _const_spec(shape, index_map, single_buffer):
    # Constant-index operands: double-buffering buys nothing, single-buffering halves
    # their VMEM footprint (the resident (D,D) weight is the big one on v7x).
    if single_buffer:
        return pl.BlockSpec(shape, index_map, pipeline_mode=pl.Buffered(1))
    return pl.BlockSpec(shape, index_map)


def _layernorm_residual(x_f32, y, gamma, beta, *, approx):
    """x + torch-style LayerNorm(y): unbiased std, eps added to std, all f32."""
    d = y.shape[-1]
    mean = jnp.mean(y, axis=-1, keepdims=True)
    cent = y - mean
    var_unbiased = jnp.sum(cent * cent, axis=-1, keepdims=True) * (1.0 / (d - 1))
    std = jnp.sqrt(var_unbiased)
    # One reciprocal per row on the EUP slot instead of a (TM, D) divide on the VPU.
    inv = pl.reciprocal(std + EPS, approx=approx)
    return x_f32 + (gamma * (cent * inv) + beta)


def _kernel_resident(x_ref, w_ref, p_ref, o_ref, *, matmul_dtype, approx):
    # x_ref: (TM, D) row tile ; w_ref: (D, D) resident weight (matmul_dtype)
    # p_ref: (3, D) f32 = [bias; gamma; beta]
    x = x_ref[...]
    y = jnp.dot(x.astype(matmul_dtype), w_ref[...],
                preferred_element_type=jnp.float32) + p_ref[0:1, :]
    # dropout(eval) == identity.
    out = _layernorm_residual(x.astype(jnp.float32), y,
                              p_ref[1:2, :], p_ref[2:3, :], approx=approx)
    o_ref[...] = out.astype(o_ref.dtype)


def _kernel_ktiled(x_ref, w_ref, p_ref, o_ref, y_acc, x_acc, *, matmul_dtype, approx, tk):
    # grid = (row tiles [parallel], K tiles [arbitrary]); weight streamed as (tk, D) slabs.
    # x_ref: (TM, tk) ; w_ref: (tk, D) ; y_acc: (TM, D) f32 ; x_acc: (TM, D) input dtype.
    k = pl.program_id(1)

    @pl.when(k == 0)
    def _():
        y_acc[...] = jnp.zeros_like(y_acc)

    x_chunk = x_ref[...]
    col0 = pl.multiple_of(k * tk, tk)
    x_acc[:, pl.ds(col0, tk)] = x_chunk          # keep residual rows resident in VMEM
    y_acc[...] += jnp.dot(x_chunk.astype(matmul_dtype), w_ref[...],
                          preferred_element_type=jnp.float32)

    @pl.when(k == pl.num_programs(1) - 1)
    def _():
        y = y_acc[...] + p_ref[0:1, :]
        out = _layernorm_residual(x_acc[...].astype(jnp.float32), y,
                                  p_ref[1:2, :], p_ref[2:3, :], approx=approx)
        o_ref[...] = out.astype(o_ref.dtype)


def prepare_sublayer_params(w, b, gamma, beta, *, matmul_dtype=jnp.bfloat16):
    """One-time parameter prep (hoisted out of the per-call path).

    Returns (w_mm, params): weight pre-cast to the MXU dtype and b/gamma/beta packed
    into a single (3, D) f32 operand.  matmul_dtype=f32 is a numerics-only knob;
    bf16 is the perf default (f32 matmul runs multi-pass on the MXU and doubles weight
    VMEM/DMA on every generation).
    """
    D = w.shape[0]
    assert w.shape == (D, D), "sublayer is Linear(size, size)"
    w_mm = jnp.asarray(w, dtype=matmul_dtype)
    params = jnp.stack(
        [jnp.asarray(b, jnp.float32).reshape(D),
         jnp.asarray(gamma, jnp.float32).reshape(D),
         jnp.asarray(beta, jnp.float32).reshape(D)], axis=0)  # (3, D)
    return w_mm, params


def sublayer_connection(x, w_mm, params, *, tm=None, tk=None,
                        approx_reciprocal=True, force_k_tiled=False):
    """x: [B, S, D] (f32 or bf16). Returns x + LayerNorm(Linear(x)), torch-style LN."""
    B, S, D = x.shape
    M = B * S
    matmul_dtype = w_mm.dtype
    x_it = jnp.dtype(x.dtype).itemsize
    o_it = x_it
    mm_it = jnp.dtype(matmul_dtype).itemsize

    vmem_cap = _vmem_cap_bytes()
    budget = int(0.75 * vmem_cap)

    def resident_bytes(t):
        # double-buffered x/out tiles + single-buffered resident weight + params + slack
        return (2 * t * D * x_it + 2 * t * D * o_it + D * D * mm_it
                + 8 * D * 4 + 2 * _MIB)

    # ---- row tile: as large as the VMEM budget permits (amortizes grid-step overhead) ----
    if tm is None:
        for cand in (512, 256, 128, 64, 32, 16, 8):
            if resident_bytes(min(cand, _round_up(M, 8))) <= budget:
                tm = cand
                break
        else:
            tm = 256  # resident weight won't fit regardless -> K-tiled path below
    tm = _round_up(min(tm, _round_up(M, 8)), 8)

    use_k_tiled = force_k_tiled or (resident_bytes(tm) > budget)

    # v7x has 2 TensorCores sharing the "parallel" grid axis: keep >= 2 row steps.
    if M > 8 and _round_up(M, tm) // tm < 2:
        tm = _round_up(-(-M // 2), 8)

    M_pad = _round_up(M, tm)
    x2 = x.reshape(M, D)
    if M_pad != M:
        # Zero rows are safe through Linear + LayerNorm (eps keeps the divide finite).
        x2 = jnp.pad(x2, ((0, M_pad - M), (0, 0)))
    grid_rows = M_pad // tm
    out_shape = jax.ShapeDtypeStruct((M_pad, D), x.dtype)

    if use_k_tiled:
        if tk is None:
            tk = next((c for c in (512, 256, 128) if D % c == 0), D)
        elif D % tk != 0:
            tk = D
        nk = D // tk

    def run(single_buffer_consts):
        if not use_k_tiled:
            kernel = functools.partial(_kernel_resident, matmul_dtype=matmul_dtype,
                                       approx=approx_reciprocal)
            vmem_limit = min(max(resident_bytes(tm) + 4 * _MIB, 32 * _MIB),
                             int(0.9 * vmem_cap))
            return pl.pallas_call(
                kernel,
                out_shape=out_shape,
                grid_spec=pltpu.PrefetchScalarGridSpec(
                    num_scalar_prefetch=0,
                    grid=(grid_rows,),
                    in_specs=[
                        pl.BlockSpec((tm, D), lambda i: (i, 0)),           # x row tile
                        _const_spec((D, D), lambda i: (0, 0),              # resident weight
                                    single_buffer_consts),
                        _const_spec((3, D), lambda i: (0, 0),              # [bias;gamma;beta]
                                    single_buffer_consts),
                    ],
                    out_specs=pl.BlockSpec((tm, D), lambda i: (i, 0)),
                ),
                compiler_params=pltpu.CompilerParams(
                    dimension_semantics=("parallel",),
                    vmem_limit_bytes=vmem_limit,
                ),
            )(x2, w_mm, params)

        # ---- K-tiled fallback: weight streamed over the contraction dim ----
        ktiled_need = (2 * tm * tk * x_it + 2 * tk * D * mm_it + 2 * tm * D * o_it
                       + tm * D * 4 + tm * D * x_it + 8 * D * 4 + 2 * _MIB)
        vmem_limit = min(max(ktiled_need + 4 * _MIB, 32 * _MIB), int(0.9 * vmem_cap))
        kernel = functools.partial(_kernel_ktiled, matmul_dtype=matmul_dtype,
                                   approx=approx_reciprocal, tk=tk)
        return pl.pallas_call(
            kernel,
            out_shape=out_shape,
            grid_spec=pltpu.PrefetchScalarGridSpec(
                num_scalar_prefetch=0,
                grid=(grid_rows, nk),
                in_specs=[
                    pl.BlockSpec((tm, tk), lambda i, k: (i, k)),           # x K-chunk
                    pl.BlockSpec((tk, D), lambda i, k: (k, 0)),            # weight slab (streamed)
                    _const_spec((3, D), lambda i, k: (0, 0),               # packed params
                                single_buffer_consts),
                ],
                out_specs=pl.BlockSpec((tm, D), lambda i, k: (i, 0)),
                scratch_shapes=[
                    pltpu.VMEM((tm, D), jnp.float32),   # y accumulator
                    pltpu.VMEM((tm, D), x.dtype),       # residual rows
                ],
            ),
            compiler_params=pltpu.CompilerParams(
                dimension_semantics=("parallel", "arbitrary"),
                vmem_limit_bytes=vmem_limit,
            ),
        )(x2, w_mm, params)

    try:
        out = run(True)
    except Exception:
        # Fallback for runtimes where pipeline_mode=pl.Buffered(1) isn't supported;
        # identical kernel, default (double) buffering on the constant operands.
        out = run(False)

    if M_pad != M:
        out = out[:M]
    return out.reshape(B, S, D)


def reference(x, w, b, gamma, beta, *, matmul_dtype=jnp.float32):
    y = jnp.einsum("bsd,de->bse",
                   x.astype(matmul_dtype), w.astype(matmul_dtype),
                   preferred_element_type=jnp.float32) + b
    mean = jnp.mean(y, axis=-1, keepdims=True)
    cent = y - mean
    var = jnp.sum(cent * cent, axis=-1, keepdims=True) / (y.shape[-1] - 1)
    std = jnp.sqrt(var)
    return x + (gamma * cent / (std + EPS) + beta)


if __name__ == "__main__":
    key = jax.random.PRNGKey(0)
    B, S, D = 2, 8, 128   # lane-dense feature dim (multiple of 128)

    kx, kw, kb = jax.random.split(key, 3)
    x = jax.random.normal(kx, (B, S, D), dtype=jnp.float32)
    w = jax.random.normal(kw, (D, D), dtype=jnp.float32) * (1.0 / jnp.sqrt(D))
    b = jax.random.normal(kb, (D,), dtype=jnp.float32) * 0.1
    gamma = jnp.ones((D,), dtype=jnp.float32)   # LayerNorm a_2
    beta = jnp.zeros((D,), dtype=jnp.float32)   # LayerNorm b_2

    # One-time parameter prep (hoisted bf16 weight cast, packed (3, D) params).
    w_mm, params = prepare_sublayer_params(w, b, gamma, beta, matmul_dtype=jnp.bfloat16)
    ref = reference(x, w, b, gamma, beta, matmul_dtype=jnp.bfloat16)

    # 1) Resident-weight path, f32 activations, bf16 MXU matmul.
    out = jax.block_until_ready(sublayer_connection(x, w_mm, params))
    assert out.shape == (B, S, D) and out.dtype == x.dtype
    assert jnp.allclose(out, ref, atol=2e-2, rtol=2e-2), "resident path mismatch"

    # 2) bf16 activations end-to-end (halves x/out HBM traffic on mem-bound v6e/v7x).
    out_bf16 = jax.block_until_ready(
        sublayer_connection(x.astype(jnp.bfloat16), w_mm, params))
    assert out_bf16.dtype == jnp.bfloat16
    assert jnp.allclose(out_bf16.astype(jnp.float32), ref, atol=5e-2, rtol=5e-2), \
        "bf16-activation path mismatch"

    # 3) K-tiled fallback (auto-selected when the (D, D) weight would overflow VMEM,
    #    e.g. D >= ~3k on v7x); forced here on a small shape to exercise the path.
    D2 = 256
    k2x, k2w = jax.random.split(jax.random.PRNGKey(1))
    x2 = jax.random.normal(k2x, (B, S, D2), dtype=jnp.float32)
    w2 = jax.random.normal(k2w, (D2, D2), dtype=jnp.float32) * (1.0 / jnp.sqrt(D2))
    b2 = jnp.zeros((D2,), jnp.float32)
    g2 = jnp.ones((D2,), jnp.float32)
    bt2 = jnp.zeros((D2,), jnp.float32)
    w2_mm, p2 = prepare_sublayer_params(w2, b2, g2, bt2, matmul_dtype=jnp.bfloat16)
    out2 = jax.block_until_ready(
        sublayer_connection(x2, w2_mm, p2, force_k_tiled=True, tk=128))
    ref2 = reference(x2, w2, b2, g2, bt2, matmul_dtype=jnp.bfloat16)
    assert jnp.allclose(out2, ref2, atol=2e-2, rtol=2e-2), "k-tiled path mismatch"

    print("KERNEL_OK")
</pallas_src>

<mosaic_0001>
module attributes {stable_mosaic.version = 11 : i64} {
  func.func @_kernel_resident(%arg0: i32, %arg1: memref<8x128xf32, #tpu.memory_space<vmem>>, %arg2: memref<128x128xbf16, #tpu.memory_space<vmem>>, %arg3: memref<3x128xf32, #tpu.memory_space<vmem>>, %arg4: memref<8x128xf32, #tpu.memory_space<vmem>>) attributes {dimension_semantics = [#tpu.dimension_semantics<parallel>], iteration_bounds = array<i64: 2>, scalar_prefetch = 0 : i64, scratch_operands = 0 : i64, tpu.core_type = #tpu.core_type<tc>, window_params = [{transform_indices = @transform_0, window_bounds = array<i64: 8, 128>}, {pipeline_mode = #tpu.pipeline_mode<synchronous>, transform_indices = @transform_1, window_bounds = array<i64: 128, 128>}, {pipeline_mode = #tpu.pipeline_mode<synchronous>, transform_indices = @transform_2, window_bounds = array<i64: 3, 128>}, {transform_indices = @transform_3, window_bounds = array<i64: 8, 128>}]} {
    %c0 = arith.constant 0 : index
    %c0_0 = arith.constant 0 : index
    %0 = vector.load %arg1[%c0, %c0_0] : memref<8x128xf32, #tpu.memory_space<vmem>>, vector<8x128xf32>
    %1 = arith.truncf %0 : vector<8x128xf32> to vector<8x128xbf16>
    %c0_1 = arith.constant 0 : index
    %c0_2 = arith.constant 0 : index
    %2 = vector.load %arg2[%c0_1, %c0_2] : memref<128x128xbf16, #tpu.memory_space<vmem>>, vector<128x128xbf16>
    %cst = arith.constant dense<0.000000e+00> : vector<8x128xf32>
    %3 = tpu.matmul %1, %2, %cst {dimension_numbers = #tpu.dot_dimension_numbers<[1], [0], [0], [1], [0, 0, 1, 1], [], []>} : vector<8x128xbf16>, vector<128x128xbf16>, vector<8x128xf32> -> vector<8x128xf32>
    %c0_3 = arith.constant 0 : index
    %c0_4 = arith.constant 0 : index
    %4 = vector.load %arg3[%c0_3, %c0_4] : memref<3x128xf32, #tpu.memory_space<vmem>>, vector<1x128xf32>
    %5 = vector.broadcast %4 : vector<1x128xf32> to vector<8x128xf32>
    %6 = arith.addf %3, %5 : vector<8x128xf32>
    %c1 = arith.constant 1 : index
    %c0_5 = arith.constant 0 : index
    %7 = vector.load %arg3[%c1, %c0_5] : memref<3x128xf32, #tpu.memory_space<vmem>>, vector<1x128xf32>
    %c2 = arith.constant 2 : index
    %c0_6 = arith.constant 0 : index
    %8 = vector.load %arg3[%c2, %c0_6] : memref<3x128xf32, #tpu.memory_space<vmem>>, vector<1x128xf32>
    %cst_7 = arith.constant dense<0.000000e+00> : vector<8xf32>
    %9 = vector.multi_reduction <add>, %6, %cst_7 [1] : vector<8x128xf32> to vector<8xf32>
    %10 = vector.shape_cast %9 : vector<8xf32> to vector<8x1xf32>
    %cst_8 = arith.constant 1.280000e+02 : f32
    %11 = vector.broadcast %cst_8 : f32 to vector<8x1xf32>
    %12 = arith.divf %10, %11 : vector<8x1xf32>
    %13 = vector.broadcast %12 : vector<8x1xf32> to vector<8x128xf32>
    %14 = arith.subf %6, %13 : vector<8x128xf32>
    %15 = arith.mulf %14, %14 : vector<8x128xf32>
    %cst_9 = arith.constant dense<0.000000e+00> : vector<8xf32>
    %16 = vector.multi_reduction <add>, %15, %cst_9 [1] : vector<8x128xf32> to vector<8xf32>
    %17 = vector.shape_cast %16 : vector<8xf32> to vector<8x1xf32>
    %cst_10 = arith.constant 0.00787401571 : f32
    %18 = vector.broadcast %cst_10 : f32 to vector<8x1xf32>
    %19 = arith.mulf %17, %18 : vector<8x1xf32>
    %20 = math.sqrt %19 : vector<8x1xf32>
    %cst_11 = arith.constant 9.99999997E-7 : f32
    %21 = vector.broadcast %cst_11 : f32 to vector<8x1xf32>
    %22 = arith.addf %20, %21 : vector<8x1xf32>
    %23 = tpu.reciprocal %22 {approx = true} : vector<8x1xf32> -> vector<8x1xf32>
    %24 = vector.broadcast %23 : vector<8x1xf32> to vector<8x128xf32>
    %25 = arith.mulf %14, %24 : vector<8x128xf32>
    %26 = vector.broadcast %7 : vector<1x128xf32> to vector<8x128xf32>
    %27 = arith.mulf %26, %25 : vector<8x128xf32>
    %28 = vector.broadcast %8 : vector<1x128xf32> to vector<8x128xf32>
    %29 = arith.addf %27, %28 : vector<8x128xf32>
    %30 = arith.addf %0, %29 : vector<8x128xf32>
    %c0_12 = arith.constant 0 : index
    %c0_13 = arith.constant 0 : index
    %31 = vector.load %arg4[%c0_12, %c0_13] : memref<8x128xf32, #tpu.memory_space<vmem>>, vector<8x128xf32>
    tpu.vector_store %arg4[%c0_12, %c0_13], %30 {strides = array<i32>} : memref<8x128xf32, #tpu.memory_space<vmem>>, vector<8x128xf32>,
    return
  }
  func.func @transform_0(%arg0: i32) -> (i32, i32) {
    %c0_i32 = arith.constant 0 : i32
    %c0_i32_0 = arith.constant 0 : i32
    return %arg0, %c0_i32 : i32, i32
  }
  func.func @transform_1(%arg0: i32) -> (i32, i32) {
    %c0_i32 = arith.constant 0 : i32
    %c0_i32_0 = arith.constant 0 : i32
    %c0_i32_1 = arith.constant 0 : i32
    return %c0_i32, %c0_i32_0 : i32, i32
  }
  func.func @transform_2(%arg0: i32) -> (i32, i32) {
    %c0_i32 = arith.constant 0 : i32
    %c0_i32_0 = arith.constant 0 : i32
    %c0_i32_1 = arith.constant 0 : i32
    return %c0_i32, %c0_i32_0 : i32, i32
  }
  func.func @transform_3(%arg0: i32) -> (i32, i32) {
    %c0_i32 = arith.constant 0 : i32
    %c0_i32_0 = arith.constant 0 : i32
    return %arg0, %c0_i32 : i32, i32
  }
}

module attributes {stable_mosaic.version = 11 : i64} {
  func.func @_kernel_resident(%arg0: i32, %arg1: memref<8x128xf32, #tpu.memory_space<vmem>>, %arg2: memref<128x128xbf16, #tpu.memory_space<vmem>>, %arg3: memref<3x128xf32, #tpu.memory_space<vmem>>, %arg4: memref<8x128xf32, #tpu.memory_space<vmem>>) attributes {dimension_semantics = [#tpu.dimension_semantics<parallel>], iteration_bounds = array<i64: 2>, scalar_prefetch = 0 : i64, scratch_operands = 0 : i64, tpu.core_type = #tpu.core_type<tc>, window_params = [{transform_indices = @transform_0, window_bounds = array<i64: 8, 128>}, {pipeline_mode = #tpu.pipeline_mode<synchronous>, transform_indices = @transform_1, window_bounds = array<i64: 128, 128>}, {pipeline_mode = #tpu.pipeline_mode<synchronous>, transform_indices = @transform_2, window_bounds = array<i64: 3, 128>}, {transform_indices = @transform_3, window_bounds = array<i64: 8, 128>}]} {
    %c0 = arith.constant 0 : index
    %c0_0 = arith.constant 0 : index
    %0 = vector.load %arg1[%c0, %c0_0] : memref<8x128xf32, #tpu.memory_space<vmem>>, vector<8x128xf32>
    %1 = arith.truncf %0 : vector<8x128xf32> to vector<8x128xbf16>
    %c0_1 = arith.constant 0 : index
    %c0_2 = arith.constant 0 : index
    %2 = vector.load %arg2[%c0_1, %c0_2] : memref<128x128xbf16, #tpu.memory_space<vmem>>, vector<128x128xbf16>
    %cst = arith.constant dense<0.000000e+00> : vector<8x128xf32>
    %3 = tpu.matmul %1, %2, %cst {dimension_numbers = #tpu.dot_dimension_numbers<[1], [0], [0], [1], [0, 0, 1, 1], [], []>} : vector<8x128xbf16>, vector<128x128xbf16>, vector<8x128xf32> -> vector<8x128xf32>
    %c0_3 = arith.constant 0 : index
    %c0_4 = arith.constant 0 : index
    %4 = vector.load %arg3[%c0_3, %c0_4] : memref<3x128xf32, #tpu.memory_space<vmem>>, vector<1x128xf32>
    %5 = vector.broadcast %4 : vector<1x128xf32> to vector<8x128xf32>
    %6 = arith.addf %3, %5 : vector<8x128xf32>
    %c1 = arith.constant 1 : index
    %c0_5 = arith.constant 0 : index
    %7 = vector.load %arg3[%c1, %c0_5] : memref<3x128xf32, #tpu.memory_space<vmem>>, vector<1x128xf32>
    %c2 = arith.constant 2 : index
    %c0_6 = arith.constant 0 : index
    %8 = vector.load %arg3[%c2, %c0_6] : memref<3x128xf32, #tpu.memory_space<vmem>>, vector<1x128xf32>
    %cst_7 = arith.constant dense<0.000000e+00> : vector<8xf32>
    %9 = vector.multi_reduction <add>, %6, %cst_7 [1] : vector<8x128xf32> to vector<8xf32>
    %10 = vector.shape_cast %9 : vector<8xf32> to vector<8x1xf32>
    %cst_8 = arith.constant 1.280000e+02 : f32
    %11 = vector.broadcast %cst_8 : f32 to vector<8x1xf32>
    %12 = arith.divf %10, %11 : vector<8x1xf32>
    %13 = vector.broadcast %12 : vector<8x1xf32> to vector<8x128xf32>
    %14 = arith.subf %6, %13 : vector<8x128xf32>
    %15 = arith.mulf %14, %14 : vector<8x128xf32>
    %cst_9 = arith.constant dense<0.000000e+00> : vector<8xf32>
    %16 = vector.multi_reduction <add>, %15, %cst_9 [1] : vector<8x128xf32> to vector<8xf32>
    %17 = vector.shape_cast %16 : vector<8xf32> to vector<8x1xf32>
    %cst_10 = arith.constant 0.00787401571 : f32
    %18 = vector.broadcast %cst_10 : f32 to vector<8x1xf32>
    %19 = arith.mulf %17, %18 : vector<8x1xf32>
    %20 = math.sqrt %19 : vector<8x1xf32>
    %cst_11 = arith.constant 9.99999997E-7 : f32
    %21 = vector.broadcast %cst_11 : f32 to vector<8x1xf32>
    %22 = arith.addf %20, %21 : vector<8x1xf32>
    %23 = tpu.reciprocal %22 {approx = true} : vector<8x1xf32> -> vector<8x1xf32>
    %24 = vector.broadcast %23 : vector<8x1xf32> to vector<8x128xf32>
    %25 = arith.mulf %14, %24 : vector<8x128xf32>
    %26 = vector.broadcast %7 : vector<1x128xf32> to vector<8x128xf32>
    %27 = arith.mulf %26, %25 : vector<8x128xf32>
    %28 = vector.broadcast %8 : vector<1x128xf32> to vector<8x128xf32>
    %29 = arith.addf %27, %28 : vector<8x128xf32>
    %30 = arith.addf %0, %29 : vector<8x128xf32>
    %c0_12 = arith.constant 0 : index
    %c0_13 = arith.constant 0 : index
    %31 = vector.load %arg4[%c0_12, %c0_13] : memref<8x128xf32, #tpu.memory_space<vmem>>, vector<8x128xf32>
    tpu.vector_store %arg4[%c0_12, %c0_13], %30 {strides = array<i32>} : memref<8x128xf32, #tpu.memory_space<vmem>>, vector<8x128xf32>,
    return
  }
  func.func @transform_0(%arg0: i32) -> (i32, i32) {
    %c0_i32 = arith.constant 0 : i32
    %c0_i32_0 = arith.constant 0 : i32
    return %arg0, %c0_i32 : i32, i32
  }
  func.func @transform_1(%arg0: i32) -> (i32, i32) {
    %c0_i32 = arith.constant 0 : i32
    %c0_i32_0 = arith.constant 0 : i32
    %c0_i32_1 = arith.constant 0 : i32
    return %c0_i32, %c0_i32_0 : i32, i32
  }
  func.func @transform_2(%arg0: i32) -> (i32, i32) {
    %c0_i32 = arith.constant 0 : i32
    %c0_i32_0 = arith.constant 0 : i32
    %c0_i32_1 = arith.constant 0 : i32
    return %c0_i32, %c0_i32_0 : i32, i32
  }
  func.func @transform_3(%arg0: i32) -> (i32, i32) {
    %c0_i32 = arith.constant 0 : i32
    %c0_i32_0 = arith.constant 0 : i32
    return %arg0, %c0_i32 : i32, i32
  }
}

</mosaic_0001>

<bundles_post_ra>
// kernel: tpu_custom_call.1
= control target key start
LH: loop header
LB: loop body
LE: loop exit
PB: predicated region body
PF: predicated region fallthrough
CT: control target
= control target key end

     0   :  { %8 = vsyncpa [#allocation3], 0  ;;  %s933_s0 = inlined_call_operand.hbm [shape: f32[16,128], index: 0, kind: input, shape index: {}]   ;;  %s934_s1 = inlined_call_operand.hbm [shape: bf16[128,128], index: 1, kind: input, shape index: {}]   ;;  %s935_s2 = inlined_call_operand.vmem [shape: f32[3,128], index: 2, kind: input, shape index: {}]   ;;  %s936_s3 = inlined_call_operand.hbm [shape: f32[16,128], index: 3, kind: output, shape index: {}]  }
   0x1   :  { %10 = vsyncpa [#allocation3 + $0x1], 0 }
   0x2   :  { %11 = vsyncpa [#allocation6], 0 }
   0x3   :  { %12 = vsyncpa [#allocation4], 0 }
   0x4   :  { %14 = vsyncpa [#allocation4 + $0x1], 0  ;;  %s724_s12 = smov 0   ;;  %s726_s13 = smov 0  }
   0x5   :  { %s728_s14 = smov 0   ;;  %s730_s15 = smov 0  }
   0x6 LB: > { %s745_s16 = sadd.s32 4294967295, %s695_s15   ;;  %s440_s17 = sadd.s32 4294967294, %s695_s15   ;;  %s695_s15 = sphi %s730_s15, %s956_s15   ;;  %s691_s14 = sphi %s728_s14, %s955_s14   ;;  %s687_s13 = sphi %s726_s13, %s954_s13   ;;  %s683_s12 = sphi %s724_s12, %s953_s12  }
   0x7   : > { %p40_p0 = scmp.ne.s32.totalorder %s687_s13, %s683_s12  ;;  %p937_p1 = scmp.eq.s32.totalorder %s745_s16, 0 }
   0x8   : > { %p112_p3 = scmp.eq.s32.totalorder %s440_s17, 1  ;;  %p441_p5 = scmp.ge.s32.totalorder %s695_s15, 1 }
   0x9   : > { %p754_p4 = por %p937_p1, %p40_p0  ;;  %p119_p7 = scmp.lt.s32.totalorder %s695_s15, 3 }
   0xa   : > { %p759_p6 = por %p112_p3, %p40_p0  ;;  %s697_s21 = smov [#allocation5]  }
   0xb   : > { %s940_s18 = scalar_select %p754_p4, 1, 0 }
   0xc   : > { %s941_s19 = scalar_select %p759_p6, 1, 0 }
   0xd   : > { %p764_p8 = pnand %p441_p5, %p119_p7  ;;  %s131_s22 = sshll.u32 %s697_s21, 4  ;;  %s768_s22 = int_to_ptr.vmem [resolvable:$true] %s131_s22 }
   0xe   : > { %s780_s24 = sadd.s32 1, %s695_s15   ;;  %s27_s25 = sadd.s32 1, %s691_s14 }
   0xf   : > { %s942_s20 = scalar_select %p764_p8, 1, 0 }
  0x10   : > { %p502_p9 = pneg %p764_p8  ;;  %s24_s26 = ssub.s32 %s695_s15, %s780_s24 }
  0x11   : > { %s567_s29 = scalar_lea.hbm %s934_s1, 1024 }
  0x12   : > { %p775_p11 = pnand %p502_p9, %p937_p1  ;;  %p568_p12 = scmp.ne.s32.totalorder %s934_s1, %s567_s29 }
  0x13   : > { %p574_p5 = scmp.lt.u32.totalorder %s567_s29, %s934_s1 }
  0x14   : > { %p569_p13 = pneg %p775_p11 }
  0x16   : > { %p570_p0 = pnand %p569_p13, %p568_p12 }
  0x18   : > { %p571_p3 = pneg %p570_p0 }
  0x1a   : > { %p576_p7 = pnand %p574_p5, %p571_p3 }
  0x1c   : > { %579 = shalt.err (!%p576_p7)
}
  0x1d   : > { %s580_s7 = scalar_lea.vmem %s768_s22, 1024  ;;  %p588_p2 = scmp.lt.s32.totalorder %s768_s22, %s768_s22 }
  0x1e   : > { %p581_p9 = scmp.ne.s32.totalorder %s768_s22, %s580_s7  ;;  %p589_p6 = scmp.lt.s32.totalorder %s580_s7, %s580_s7 }
  0x20   : > { %p583_p10 = pnand %p581_p9, %p569_p13  ;;  %p590_p4 = por %p589_p6, %p588_p2 }
  0x22   : > { %p584_p1 = pneg %p583_p10 }
  0x24   : > { %p591_p8 = pnand %p590_p4, %p584_p1 }
  0x26   : > { %594 = shalt.err (!%p591_p8)
}
  0x27   : > { %s698_s8 = smov 64   ;;  %s699_s9 = smov 4  }
  0x28   : > { %505 = dma.hbm_to_vmem [thread:$0]  (!%p775_p11), %s934_s1, 1024, %s768_s22, [#allocation6], %s698_s8, %s698_s8, %s699_s9  }
  0x29   : > { %p25_p2 = scmp.eq.s32.totalorder %s24_s26, 0  ;;  %p34_p1 = scmp.ne.s32.totalorder %s691_s14, %s687_s13 }
  0x2a   : > { %p35_p4 = scmp.eq.s32.totalorder %s695_s15, 0  ;;  %p515_p6 = scmp.lt.s32.totalorder %s695_s15, 2 }
  0x2b   : > { %s811_s17 = scalar_select %p25_p2, %s691_s14, %s27_s25  }
  0x2c   : > { %p36_p8 = por %p35_p4, %p34_p1  ;;  %p944_p10 = scmp.eq.s32.totalorder %s745_s16, 1 }
  0x2d   : > { %s148_s27 = sand.u32 1, %s691_s14   ;;  %s445_s28 = sshll.u32 %s695_s15, 7 }
  0x2e   : > { %p815_p12 = por %p944_p10, %p34_p1  ;;  %s444_s29 = sshll.u32 %s148_s27, 3 }
  0x2f   : > { %s824_s4 = scalar_lea.hbm %s933_s0, %s445_s28  ;;  %s152_s22 = scalar_lea.vmem [#allocation2], %s444_s29 }
  0x30   : > { %s159_s25 = sshll.u32 %s152_s22, 4  ;;  %p826_p11 = pnand %p515_p6, %p36_p8  ;;  %s830_s25 = int_to_ptr.vmem [resolvable:$true] %s159_s25 }
  0x31   : > { %s149_s5 = scalar_lea.sflag [#allocation3], %s148_s27  ;;  %s595_s6 = scalar_lea.hbm %s824_s4, 128 }
  0x32   : > { %p596_p13 = scmp.ne.s32.totalorder %s824_s4, %s595_s6  ;;  %p597_p0 = pneg %p826_p11 }
  0x33   : > { %s600_s9 = scalar_lea.hbm %s933_s0, 256  ;;  %p601_p7 = scmp.lt.u32.totalorder %s824_s4, %s933_s0 }
  0x34   : > { %p598_p3 = pnand %p597_p0, %p596_p13  ;;  %p602_p9 = scmp.lt.u32.totalorder %s600_s9, %s595_s6 }
  0x35   : > { %p604_p1 = scmp.lt.u32.totalorder %s595_s6, %s824_s4 }
  0x36   : > { %p599_p5 = pneg %p598_p3  ;;  %p603_p2 = por %p602_p9, %p601_p7 }
  0x38   : > { %p605_p4 = por %p604_p1, %p603_p2 }
  0x3a   : > { %p606_p6 = pnand %p605_p4, %p599_p5 }
  0x3c   : > { %609 = shalt.err (!%p606_p6)
}
  0x3d   : > { %s610_s27 = scalar_lea.vmem %s830_s25, 128  ;;  %s700_s28 = smov [#allocation2]  }
  0x3e   : > { %p611_p8 = scmp.ne.s32.totalorder %s830_s25, %s610_s27  ;;  %s615_s29 = sshll.u32 %s700_s28, 4  ;;  %s616_s29 = int_to_ptr.vmem [resolvable:$false] %s615_s29 }
  0x3f   : > { %s617_s23 = scalar_lea.vmem %s616_s29, 256  ;;  %p618_p3 = scmp.lt.s32.totalorder %s830_s25, %s616_s29 }
  0x40   : > { %p613_p10 = pnand %p611_p8, %p597_p0  ;;  %p619_p7 = scmp.lt.s32.totalorder %s617_s23, %s610_s27 }
  0x42   : > { %p614_p13 = pneg %p613_p10  ;;  %p620_p9 = por %p619_p7, %p618_p3 }
  0x44   : > { %p621_p2 = pnand %p620_p9, %p614_p13 }
  0x46   : > { %624 = shalt.err (!%p621_p2)
}
  0x47   : > { %509 = dma.hbm_to_vmem [thread:$0]  (!%p826_p11), %s824_s4, 128, %s830_s25, %s149_s5  }
  0x48   : > { %p947_p5 = scmp.ne.s32.totalorder %s942_s20, 0 }
  0x49   : > { %s860_s30 = sand.u32 (!%p947_p5), 1, %s687_s13   ;;  %p948_p0 = scmp.ne.s32.totalorder (!%p947_p5), %s940_s18, 0 }
  0x4a   : > { %168 = sbr.rel (%p947_p5) target bundleno = 674 (0x2a2), region = 32  ;;  %s447_s22 = sshll.u32 (!%p947_p5), %s860_s30, 3 }
  0x4b   : > { %s171_s6 = scalar_lea.sflag (!%p947_p5), [#allocation3], %s860_s30  ;;  %s174_s7 = scalar_lea.vmem (!%p947_p5), [#allocation2], %s447_s22 }
  0x51   : > { %670 = dma.done.wait (%p948_p0), %s171_s6, 128  }
  0x52   : > { %672 = vsyncadd (%p948_p0), %s171_s6, 4294967168  ;;  %p949_p11 = scmp.eq.s32.totalorder %s745_s16, 0 }
  0x54   : > { %674 = dma.done.wait (%p949_p11), [#allocation6], 1024   ;;  %p950_p1 = pmov %p949_p11 }
  0x55   : > { %v701_v0 = vmov 0.0   ;;  %vm702_vm0 = vmmov 0   ;;  %v555_v1 = vld [vmem:[#allocation5] sm:$0xff]   ;;  %v556_v2 = vld [vmem:[#allocation5 + $0x8] sm:$0xff]   ;;  %v557_v3 = vld [vmem:[#allocation5 + $0x10] sm:$0xff]   ;;  %s462_s8 = sshll.u32 %s745_s16, 7 }
  0x56   : > { %676 = vsyncadd (%p950_p1), [#allocation6], 4294966272  ;;  %474 = vmatprep.subr.bf16.mxu0 %v701_v0  ;;  %490 = vmatprep.mubr.msk.bf16.mxu0 %vm702_vm0, %v701_v0  ;;  %v558_v4 = vld [vmem:[#allocation5 + $0x18] sm:$0xff]   ;;  %v559_v5 = vld [vmem:[#allocation5 + $0x20] sm:$0xff]   ;;  %s200_s9 = scalar_lea.vmem [#allocation7], %s447_s22  ;;  %s889_s28 = scalar_lea.hbm %s936_s3, %s462_s8 }
  0x57   : > { %475 = vmatpush3.bf16.msra.mxu0 %v555_v1  ;;  %v560_v6 = vld [vmem:[#allocation5 + $0x28] sm:$0xff]   ;;  %v561_v7 = vld [vmem:[#allocation5 + $0x30] sm:$0xff]   ;;  %v562_v8 = vld [vmem:[#allocation5 + $0x38] sm:$0xff]   ;;  %s360_s10 = sshll.u32 %s200_s9, 4  ;;  %s347_s29 = scalar_lea.sflag [#allocation4], %s860_s30  ;;  %s891_s10 = int_to_ptr.vmem [resolvable:$true] %s360_s10 }
  0x58   : > { %476 = vmatprep.subr.bf16.mxu0 %v701_v0  ;;  %v202_v9 = vld [vmem:[%s174_s7] sm:$0xff]  ;;  %s625_s23 = scalar_lea.vmem %s891_s10, 128  ;;  %s703_s16 = smov [#allocation7]  }
  0x59   : > { %v203_v10 = vpack.c.bf16 %v202_v9, %v202_v9  ;;  %v450_v11 = vld [vmem:[%s935_s2] ss:$0 sm:$0xff]  ;;  %v459_v30 = vld [vmem:[%s935_s2 + $0x1] ss:$0 sm:$0xff]  ;;  %v460_v32 = vld [vmem:[%s935_s2 + $0x2] ss:$0 sm:$0xff]  ;;  %p626_p4 = scmp.ne.s32.totalorder %s891_s10, %s625_s23 }
  0x5a   : > { %s629_s22 = sshll.u32 %s703_s16, 4  ;;  %s630_s22 = int_to_ptr.vmem [resolvable:$false] %s629_s22 }
  0x5b   : > { %477 = vmatpush3.bf16.msra.mxu0 %v556_v2  ;;  %p627_p6 = pnand %p626_p4, %p815_p12  ;;  %s631_s6 = scalar_lea.vmem %s630_s22, 256 }
  0x5c   : > { %478 = vmatprep.subr.bf16.mxu0 %v701_v0  ;;  %p632_p10 = scmp.lt.s32.totalorder %s891_s10, %s630_s22  ;;  %p633_p13 = scmp.lt.s32.totalorder %s631_s6, %s625_s23 }
  0x5d   : > { %p628_p8 = pneg %p627_p6 }
  0x5e   : > { %p634_p3 = por %p633_p13, %p632_p10 }
  0x5f   : > { %479 = vmatpush3.bf16.msra.mxu0 %v557_v3 }
  0x60   : > { %480 = vmatprep.subr.bf16.mxu0 %v701_v0  ;;  %p635_p7 = pnand %p634_p3, %p628_p8 }
  0x63   : > { %481 = vmatpush3.bf16.msra.mxu0 %v558_v4 }
  0x64   : > { %482 = vmatprep.subr.bf16.mxu0 %v701_v0 }
  0x67   : > { %483 = vmatpush3.bf16.msra.mxu0 %v559_v5 }
  0x68   : > { %484 = vmatprep.subr.bf16.mxu0 %v701_v0 }
  0x6b   : > { %485 = vmatpush3.bf16.msra.mxu0 %v560_v6 }
  0x6c   : > { %486 = vmatprep.subr.bf16.mxu0 %v701_v0 }
  0x6f   : > { %487 = vmatpush3.bf16.msra.mxu0 %v561_v7 }
  0x70   : > { %488 = vmatprep.subr.bf16.mxu0 %v701_v0 }
  0x73   : > { %489 = vmatpush3.bf16.msra.mxu0 %v562_v8 }
  0x76   : > { %491 = vmatmul.mubr.bf16.vlgmr.msra.gmra.mrb[0].mxu0 %v203_v10 }
 0x149   : > { %v307_v12 = vpop.f32.mrb[0].mxu0 }
 0x14a   : > { %v308_v13 = vadd.f32 %v450_v11, %v307_v12  ;;  %v492_v14 = vpop.f32.mrb[1].mxu0 }
 0x14b   : > { %v310_v15 = vpop.f32.mrb[2].mxu0 }
 0x14c   : > { %315 = vadd.xlane.f32.xlu0 %v308_v13  ;;  %v493_v16 = vpop.f32.mrb[3].mxu0 }
 0x1d9   : > { %v316_v17 = vpop.xlane.xlu0 %315 }
 0x1da   : > { %v318_v18 = vmul.f32 0.0078125, %v316_v17 }
 0x1dc   : > { %v319_v19 = vsub.f32 %v308_v13, %v318_v18 }
 0x1de   : > { %v320_v20 = vmul.f32 %v319_v19, %v319_v19 }
 0x1e0   : > { %321 = vadd.xlane.f32.xlu0 %v320_v20 }
 0x26d   : > { %v322_v21 = vpop.xlane.xlu0 %321 }
 0x26e   : > { %v323_v22 = vmul.f32 0.007874016, %v322_v21 }
 0x270   : > { %563 = vrsqrt.f32 %v323_v22  ;;  %vm326_vm1 = vcmp.eq.f32.partialorder %v323_v22, inf  ;;  %v329_v25 = vand.u32 2147483648, %v323_v22  ;;  %vm328_vm2 = vcmp.eq.f32.partialorder %v323_v22, 0.0 }
 0x27a   : > { %v564_v23 = vpop.eup %563 }
 0x27b   : > { %v325_v24 = vmul.f32 %v564_v23, %v323_v22 }
 0x27d   : > { %v327_v26 = vsel %vm326_vm1, %v323_v22, %v325_v24 }
 0x27e   : > { %v330_v27 = vsel %vm328_vm2, %v329_v25, %v327_v26 }
 0x27f   : > { %v331_v28 = vadd.f32 1e-06, %v330_v27 }
 0x281   : > { %565 = vrcp.f32 %v331_v28 }
 0x28b   : > { %v566_v29 = vpop.eup %565 }
 0x28c   : > { %v333_v31 = vmul.f32 %v566_v29, %v319_v19 }
 0x28e   : > { %v338_v33 = vmul.f32 %v459_v30, %v333_v31 }
 0x290   : > { %v343_v34 = vadd.f32 %v460_v32, %v338_v33 }
 0x292   : > { %v344_v35 = vadd.f32 %v343_v34, %v202_v9 }
 0x294   : > { %345 = vst [vmem:[%s200_s9] sm:$0xff] %v344_v35 }
 0x295   : > { %638 = shalt.err (!%p635_p7)
}
 0x296   : > { %s639_s30 = scalar_lea.hbm %s889_s28, 128  ;;  %s643_s20 = scalar_lea.hbm %s936_s3, 256 }
 0x297   : > { %p640_p9 = scmp.ne.s32.totalorder %s889_s28, %s639_s30  ;;  %p644_p0 = scmp.lt.u32.totalorder %s889_s28, %s936_s3 }
 0x298   : > { %p645_p11 = scmp.lt.u32.totalorder %s643_s20, %s639_s30  ;;  %p647_p4 = scmp.lt.u32.totalorder %s639_s30, %s889_s28 }
 0x299   : > { %p641_p2 = pnand %p640_p9, %p815_p12 }
 0x29a   : > { %p646_p1 = por %p645_p11, %p644_p0 }
 0x29b   : > { %p642_p5 = pneg %p641_p2 }
 0x29c   : > { %p648_p6 = por %p647_p4, %p646_p1 }
 0x29e   : > { %p649_p8 = pnand %p648_p6, %p642_p5 }
 0x2a0   : > { %652 = shalt.err (!%p649_p8)
}
 0x2a1   : > { %500 = dma.vmem_to_hbm [thread:$0]  (%p815_p12), %s891_s10, 128, %s889_s28, %s347_s29  }
 0x2a2 PF: > { %s372_s26 = sand.u32 1, %s683_s12   ;;  %p951_p10 = scmp.ne.s32.totalorder %s941_s19, 0 }
 0x2a3   : > { %p952_p13 = scmp.ge.s32.totalorder %s695_s15, 2  ;;  %s373_s5 = scalar_lea.sflag [#allocation4], %s372_s26 }
 0x2a5   : > { %p511_p3 = pnand %p952_p13, %p951_p10 }
 0x2a7   : > { %678 = dma.done.wait (!%p511_p3), %s373_s5, 128  }
 0x2a8   : > { %680 = vsyncadd (!%p511_p3), %s373_s5, 4294967168  ;;  %p17_p7 = scmp.ge.s32.totalorder %s780_s24, 4   ;;  %s953_s12 = smov %s687_s13 }
 0x2a9   : > { %s954_s13 = smov %s691_s14  ;;  %s955_s14 = smov %s811_s17 }
 0x2aa   : > { %s956_s15 = smov %s780_s24  ;;  %19 = sbr.rel (!%p17_p7) target bundleno = 6 (0x6), region = 81 }
 0x2b1   :  { %378 = vsyncpa [#allocation3], 1 }
 0x2b2   :  { %380 = vsyncpa [#allocation3 + $0x1], 1 }
 0x2b3   :  { %381 = vsyncpa [#allocation6], 1 }
 0x2b4   :  { %382 = vsyncpa [#allocation4], 1 }
 0x2b5   :  { %384 = vsyncpa [#allocation4 + $0x1], 1 }

// kernel: tpu_custom_call.1
= control target key start
LH: loop header
LB: loop body
LE: loop exit
PB: predicated region body
PF: predicated region fallthrough
CT: control target
= control target key end

     0   :  { %8 = vsyncpa [#allocation3], 0  ;;  %s933_s0 = inlined_call_operand.hbm [shape: f32[16,128], index: 0, kind: input, shape index: {}]   ;;  %s934_s1 = inlined_call_operand.hbm [shape: bf16[128,128], index: 1, kind: input, shape index: {}]   ;;  %s935_s2 = inlined_call_operand.vmem [shape: f32[3,128], index: 2, kind: input, shape index: {}]   ;;  %s936_s3 = inlined_call_operand.hbm [shape: f32[16,128], index: 3, kind: output, shape index: {}]  }
   0x1   :  { %10 = vsyncpa [#allocation3 + $0x1], 0 }
   0x2   :  { %11 = vsyncpa [#allocation6], 0 }
   0x3   :  { %12 = vsyncpa [#allocation4], 0 }
   0x4   :  { %14 = vsyncpa [#allocation4 + $0x1], 0  ;;  %s724_s12 = smov 0   ;;  %s726_s13 = smov 0  }
   0x5   :  { %s728_s14 = smov 0   ;;  %s730_s15 = smov 0  }
   0x6 LB: > { %s745_s16 = sadd.s32 4294967295, %s695_s15   ;;  %s440_s17 = sadd.s32 4294967294, %s695_s15   ;;  %s695_s15 = sphi %s730_s15, %s956_s15   ;;  %s691_s14 = sphi %s728_s14, %s955_s14   ;;  %s687_s13 = sphi %s726_s13, %s954_s13   ;;  %s683_s12 = sphi %s724_s12, %s953_s12  }
   0x7   : > { %p40_p0 = scmp.ne.s32.totalorder %s687_s13, %s683_s12  ;;  %p937_p1 = scmp.eq.s32.totalorder %s745_s16, 0 }
   0x8   : > { %p112_p3 = scmp.eq.s32.totalorder %s440_s17, 1  ;;  %p441_p5 = scmp.ge.s32.totalorder %s695_s15, 1 }
   0x9   : > { %p754_p4 = por %p937_p1, %p40_p0  ;;  %p119_p7 = scmp.lt.s32.totalorder %s695_s15, 3 }
   0xa   : > { %p759_p6 = por %p112_p3, %p40_p0  ;;  %s697_s21 = smov [#allocation5]  }
   0xb   : > { %s940_s18 = scalar_select %p754_p4, 1, 0 }
   0xc   : > { %s941_s19 = scalar_select %p759_p6, 1, 0 }
   0xd   : > { %p764_p8 = pnand %p441_p5, %p119_p7  ;;  %s131_s22 = sshll.u32 %s697_s21, 4  ;;  %s768_s22 = int_to_ptr.vmem [resolvable:$true] %s131_s22 }
   0xe   : > { %s780_s24 = sadd.s32 1, %s695_s15   ;;  %s27_s25 = sadd.s32 1, %s691_s14 }
   0xf   : > { %s942_s20 = scalar_select %p764_p8, 1, 0 }
  0x10   : > { %p502_p9 = pneg %p764_p8  ;;  %s24_s26 = ssub.s32 %s695_s15, %s780_s24 }
  0x11   : > { %s567_s29 = scalar_lea.hbm %s934_s1, 1024 }
  0x12   : > { %p775_p11 = pnand %p502_p9, %p937_p1  ;;  %p568_p12 = scmp.ne.s32.totalorder %s934_s1, %s567_s29 }
  0x13   : > { %p574_p5 = scmp.lt.u32.totalorder %s567_s29, %s934_s1 }
  0x14   : > { %p569_p13 = pneg %p775_p11 }
  0x16   : > { %p570_p0 = pnand %p569_p13, %p568_p12 }
  0x18   : > { %p571_p3 = pneg %p570_p0 }
  0x1a   : > { %p576_p7 = pnand %p574_p5, %p571_p3 }
  0x1c   : > { %579 = shalt.err (!%p576_p7)
}
  0x1d   : > { %s580_s7 = scalar_lea.vmem %s768_s22, 1024  ;;  %p588_p2 = scmp.lt.s32.totalorder %s768_s22, %s768_s22 }
  0x1e   : > { %p581_p9 = scmp.ne.s32.totalorder %s768_s22, %s580_s7  ;;  %p589_p6 = scmp.lt.s32.totalorder %s580_s7, %s580_s7 }
  0x20   : > { %p583_p10 = pnand %p581_p9, %p569_p13  ;;  %p590_p4 = por %p589_p6, %p588_p2 }
  0x22   : > { %p584_p1 = pneg %p583_p10 }
  0x24   : > { %p591_p8 = pnand %p590_p4, %p584_p1 }
  0x26   : > { %594 = shalt.err (!%p591_p8)
}
  0x27   : > { %s698_s8 = smov 64   ;;  %s699_s9 = smov 4  }
  0x28   : > { %505 = dma.hbm_to_vmem [thread:$0]  (!%p775_p11), %s934_s1, 1024, %s768_s22, [#allocation6], %s698_s8, %s698_s8, %s699_s9  }
  0x29   : > { %p25_p2 = scmp.eq.s32.totalorder %s24_s26, 0  ;;  %p34_p1 = scmp.ne.s32.totalorder %s691_s14, %s687_s13 }
  0x2a   : > { %p35_p4 = scmp.eq.s32.totalorder %s695_s15, 0  ;;  %p515_p6 = scmp.lt.s32.totalorder %s695_s15, 2 }
  0x2b   : > { %s811_s17 = scalar_select %p25_p2, %s691_s14, %s27_s25  }
  0x2c   : > { %p36_p8 = por %p35_p4, %p34_p1  ;;  %p944_p10 = scmp.eq.s32.totalorder %s745_s16, 1 }
  0x2d   : > { %s148_s27 = sand.u32 1, %s691_s14   ;;  %s445_s28 = sshll.u32 %s695_s15, 7 }
  0x2e   : > { %p815_p12 = por %p944_p10, %p34_p1  ;;  %s444_s29 = sshll.u32 %s148_s27, 3 }
  0x2f   : > { %s824_s4 = scalar_lea.hbm %s933_s0, %s445_s28  ;;  %s152_s22 = scalar_lea.vmem [#allocation2], %s444_s29 }
  0x30   : > { %s159_s25 = sshll.u32 %s152_s22, 4  ;;  %p826_p11 = pnand %p515_p6, %p36_p8  ;;  %s830_s25 = int_to_ptr.vmem [resolvable:$true] %s159_s25 }
  0x31   : > { %s149_s5 = scalar_lea.sflag [#allocation3], %s148_s27  ;;  %s595_s6 = scalar_lea.hbm %s824_s4, 128 }
  0x32   : > { %p596_p13 = scmp.ne.s32.totalorder %s824_s4, %s595_s6  ;;  %p597_p0 = pneg %p826_p11 }
  0x33   : > { %s600_s9 = scalar_lea.hbm %s933_s0, 256  ;;  %p601_p7 = scmp.lt.u32.totalorder %s824_s4, %s933_s0 }
  0x34   : > { %p598_p3 = pnand %p597_p0, %p596_p13  ;;  %p602_p9 = scmp.lt.u32.totalorder %s600_s9, %s595_s6 }
  0x35   : > { %p604_p1 = scmp.lt.u32.totalorder %s595_s6, %s824_s4 }
  0x36   : > { %p599_p5 = pneg %p598_p3  ;;  %p603_p2 = por %p602_p9, %p601_p7 }
  0x38   : > { %p605_p4 = por %p604_p1, %p603_p2 }
  0x3a   : > { %p606_p6 = pnand %p605_p4, %p599_p5 }
  0x3c   : > { %609 = shalt.err (!%p606_p6)
}
  0x3d   : > { %s610_s27 = scalar_lea.vmem %s830_s25, 128  ;;  %s700_s28 = smov [#allocation2]  }
  0x3e   : > { %p611_p8 = scmp.ne.s32.totalorder %s830_s25, %s610_s27  ;;  %s615_s29 = sshll.u32 %s700_s28, 4  ;;  %s616_s29 = int_to_ptr.vmem [resolvable:$false] %s615_s29 }
  0x3f   : > { %s617_s23 = scalar_lea.vmem %s616_s29, 256  ;;  %p618_p3 = scmp.lt.s32.totalorder %s830_s25, %s616_s29 }
  0x40   : > { %p613_p10 = pnand %p611_p8, %p597_p0  ;;  %p619_p7 = scmp.lt.s32.totalorder %s617_s23, %s610_s27 }
  0x42   : > { %p614_p13 = pneg %p613_p10  ;;  %p620_p9 = por %p619_p7, %p618_p3 }
  0x44   : > { %p621_p2 = pnand %p620_p9, %p614_p13 }
  0x46   : > { %624 = shalt.err (!%p621_p2)
}
  0x47   : > { %509 = dma.hbm_to_vmem [thread:$0]  (!%p826_p11), %s824_s4, 128, %s830_s25, %s149_s5  }
  0x48   : > { %p947_p5 = scmp.ne.s32.totalorder %s942_s20, 0 }
  0x49   : > { %s860_s30 = sand.u32 (!%p947_p5), 1, %s687_s13   ;;  %p948_p0 = scmp.ne.s32.totalorder (!%p947_p5), %s940_s18, 0 }
  0x4a   : > { %168 = sbr.rel (%p947_p5) target bundleno = 674 (0x2a2), region = 32  ;;  %s447_s22 = sshll.u32 (!%p947_p5), %s860_s30, 3 }
  0x4b   : > { %s171_s6 = scalar_lea.sflag (!%p947_p5), [#allocation3], %s860_s30  ;;  %s174_s7 = scalar_lea.vmem (!%p947_p5), [#allocation2], %s447_s22 }
  0x51   : > { %670 = dma.done.wait (%p948_p0), %s171_s6, 128  }
  0x52   : > { %672 = vsyncadd (%p948_p0), %s171_s6, 4294967168  ;;  %p949_p11 = scmp.eq.s32.totalorder %s745_s16, 0 }
  0x54   : > { %674 = dma.done.wait (%p949_p11), [#allocation6], 1024   ;;  %p950_p1 = pmov %p949_p11 }
  0x55   : > { %v701_v0 = vmov 0.0   ;;  %vm702_vm0 = vmmov 0   ;;  %v555_v1 = vld [vmem:[#allocation5] sm:$0xff]   ;;  %v556_v2 = vld [vmem:[#allocation5 + $0x8] sm:$0xff]   ;;  %v557_v3 = vld [vmem:[#allocation5 + $0x10] sm:$0xff]   ;;  %s462_s8 = sshll.u32 %s745_s16, 7 }
  0x56   : > { %676 = vsyncadd (%p950_p1), [#allocation6], 4294966272  ;;  %474 = vmatprep.subr.bf16.mxu0 %v701_v0  ;;  %490 = vmatprep.mubr.msk.bf16.mxu0 %vm702_vm0, %v701_v0  ;;  %v558_v4 = vld [vmem:[#allocation5 + $0x18] sm:$0xff]   ;;  %v559_v5 = vld [vmem:[#allocation5 + $0x20] sm:$0xff]   ;;  %s200_s9 = scalar_lea.vmem [#allocation7], %s447_s22  ;;  %s889_s28 = scalar_lea.hbm %s936_s3, %s462_s8 }
  0x57   : > { %475 = vmatpush3.bf16.msra.mxu0 %v555_v1  ;;  %v560_v6 = vld [vmem:[#allocation5 + $0x28] sm:$0xff]   ;;  %v561_v7 = vld [vmem:[#allocation5 + $0x30] sm:$0xff]   ;;  %v562_v8 = vld [vmem:[#allocation5 + $0x38] sm:$0xff]   ;;  %s360_s10 = sshll.u32 %s200_s9, 4  ;;  %s347_s29 = scalar_lea.sflag [#allocation4], %s860_s30  ;;  %s891_s10 = int_to_ptr.vmem [resolvable:$true] %s360_s10 }
  0x58   : > { %476 = vmatprep.subr.bf16.mxu0 %v701_v0  ;;  %v202_v9 = vld [vmem:[%s174_s7] sm:$0xff]  ;;  %s625_s23 = scalar_lea.vmem %s891_s10, 128  ;;  %s703_s16 = smov [#allocation7]  }
  0x59   : > { %v203_v10 = vpack.c.bf16 %v202_v9, %v202_v9  ;;  %v450_v11 = vld [vmem:[%s935_s2] ss:$0 sm:$0xff]  ;;  %v459_v30 = vld [vmem:[%s935_s2 + $0x1] ss:$0 sm:$0xff]  ;;  %v460_v32 = vld [vmem:[%s935_s2 + $0x2] ss:$0 sm:$0xff]  ;;  %p626_p4 = scmp.ne.s32.totalorder %s891_s10, %s625_s23 }
  0x5a   : > { %s629_s22 = sshll.u32 %s703_s16, 4  ;;  %s630_s22 = int_to_ptr.vmem [resolvable:$false] %s629_s22 }
  0x5b   : > { %477 = vmatpush3.bf16.msra.mxu0 %v556_v2  ;;  %p627_p6 = pnand %p626_p4, %p815_p12  ;;  %s631_s6 = scalar_lea.vmem %s630_s22, 256 }
  0x5c   : > { %478 = vmatprep.subr.bf16.mxu0 %v701_v0  ;;  %p632_p10 = scmp.lt.s32.totalorder %s891_s10, %s630_s22  ;;  %p633_p13 = scmp.lt.s32.totalorder %s631_s6, %s625_s23 }
  0x5d   : > { %p628_p8 = pneg %p627_p6 }
  0x5e   : > { %p634_p3 = por %p633_p13, %p632_p10 }
  0x5f   : > { %479 = vmatpush3.bf16.msra.mxu0 %v557_v3 }
  0x60   : > { %480 = vmatprep.subr.bf16.mxu0 %v701_v0  ;;  %p635_p7 = pnand %p634_p3, %p628_p8 }
  0x63   : > { %481 = vmatpush3.bf16.msra.mxu0 %v558_v4 }
  0x64   : > { %482 = vmatprep.subr.bf16.mxu0 %v701_v0 }
  0x67   : > { %483 = vmatpush3.bf16.msra.mxu0 %v559_v5 }
  0x68   : > { %484 = vmatprep.subr.bf16.mxu0 %v701_v0 }
  0x6b   : > { %485 = vmatpush3.bf16.msra.mxu0 %v560_v6 }
  0x6c   : > { %486 = vmatprep.subr.bf16.mxu0 %v701_v0 }
  0x6f   : > { %487 = vmatpush3.bf16.msra.mxu0 %v561_v7 }
  0x70   : > { %488 = vmatprep.subr.bf16.mxu0 %v701_v0 }
  0x73   : > { %489 = vmatpush3.bf16.msra.mxu0 %v562_v8 }
  0x76   : > { %491 = vmatmul.mubr.bf16.vlgmr.msra.gmra.mrb[0].mxu0 %v203_v10 }
 0x149   : > { %v307_v12 = vpop.f32.mrb[0].mxu0 }
 0x14a   : > { %v308_v13 = vadd.f32 %v450_v11, %v307_v12  ;;  %v492_v14 = vpop.f32.mrb[1].mxu0 }
 0x14b   : > { %v310_v15 = vpop.f32.mrb[2].mxu0 }
 0x14c   : > { %315 = vadd.xlane.f32.xlu0 %v308_v13  ;;  %v493_v16 = vpop.f32.mrb[3].mxu0 }
 0x1d9   : > { %v316_v17 = vpop.xlane.xlu0 %315 }
 0x1da   : > { %v318_v18 = vmul.f32 0.0078125, %v316_v17 }
 0x1dc   : > { %v319_v19 = vsub.f32 %v308_v13, %v318_v18 }
 0x1de   : > { %v320_v20 = vmul.f32 %v319_v19, %v319_v19 }
 0x1e0   : > { %321 = vadd.xlane.f32.xlu0 %v320_v20 }
 0x26d   : > { %v322_v21 = vpop.xlane.xlu0 %321 }
 0x26e   : > { %v323_v22 = vmul.f32 0.007874016, %v322_v21 }
 0x270   : > { %563 = vrsqrt.f32 %v323_v22  ;;  %vm326_vm1 = vcmp.eq.f32.partialorder %v323_v22, inf  ;;  %v329_v25 = vand.u32 2147483648, %v323_v22  ;;  %vm328_vm2 = vcmp.eq.f32.partialorder %v323_v22, 0.0 }
 0x27a   : > { %v564_v23 = vpop.eup %563 }
 0x27b   : > { %v325_v24 = vmul.f32 %v564_v23, %v323_v22 }
 0x27d   : > { %v327_v26 = vsel %vm326_vm1, %v323_v22, %v325_v24 }
 0x27e   : > { %v330_v27 = vsel %vm328_vm2, %v329_v25, %v327_v26 }
 0x27f   : > { %v331_v28 = vadd.f32 1e-06, %v330_v27 }
 0x281   : > { %565 = vrcp.f32 %v331_v28 }
 0x28b   : > { %v566_v29 = vpop.eup %565 }
 0x28c   : > { %v333_v31 = vmul.f32 %v566_v29, %v319_v19 }
 0x28e   : > { %v338_v33 = vmul.f32 %v459_v30, %v333_v31 }
 0x290   : > { %v343_v34 = vadd.f32 %v460_v32, %v338_v33 }
 0x292   : > { %v344_v35 = vadd.f32 %v343_v34, %v202_v9 }
 0x294   : > { %345 = vst [vmem:[%s200_s9] sm:$0xff] %v344_v35 }
 0x295   : > { %638 = shalt.err (!%p635_p7)
}
 0x296   : > { %s639_s30 = scalar_lea.hbm %s889_s28, 128  ;;  %s643_s20 = scalar_lea.hbm %s936_s3, 256 }
 0x297   : > { %p640_p9 = scmp.ne.s32.totalorder %s889_s28, %s639_s30  ;;  %p644_p0 = scmp.lt.u32.totalorder %s889_s28, %s936_s3 }
 0x298   : > { %p645_p11 = scmp.lt.u32.totalorder %s643_s20, %s639_s30  ;;  %p647_p4 = scmp.lt.u32.totalorder %s639_s30, %s889_s28 }
 0x299   : > { %p641_p2 = pnand %p640_p9, %p815_p12 }
 0x29a   : > { %p646_p1 = por %p645_p11, %p644_p0 }
 0x29b   : > { %p642_p5 = pneg %p641_p2 }
 0x29c   : > { %p648_p6 = por %p647_p4, %p646_p1 }
 0x29e   : > { %p649_p8 = pnand %p648_p6, %p642_p5 }
 0x2a0   : > { %652 = shalt.err (!%p649_p8)
}
 0x2a1   : > { %500 = dma.vmem_to_hbm [thread:$0]  (%p815_p12), %s891_s10, 128, %s889_s28, %s347_s29  }
 0x2a2 PF: > { %s372_s26 = sand.u32 1, %s683_s12   ;;  %p951_p10 = scmp.ne.s32.totalorder %s941_s19, 0 }
 0x2a3   : > { %p952_p13 = scmp.ge.s32.totalorder %s695_s15, 2  ;;  %s373_s5 = scalar_lea.sflag [#allocation4], %s372_s26 }
 0x2a5   : > { %p511_p3 = pnand %p952_p13, %p951_p10 }
 0x2a7   : > { %678 = dma.done.wait (!%p511_p3), %s373_s5, 128  }
 0x2a8   : > { %680 = vsyncadd (!%p511_p3), %s373_s5, 4294967168  ;;  %p17_p7 = scmp.ge.s32.totalorder %s780_s24, 4   ;;  %s953_s12 = smov %s687_s13 }
 0x2a9   : > { %s954_s13 = smov %s691_s14  ;;  %s955_s14 = smov %s811_s17 }
 0x2aa   : > { %s956_s15 = smov %s780_s24  ;;  %19 = sbr.rel (!%p17_p7) target bundleno = 6 (0x6), region = 81 }
 0x2b1   :  { %378 = vsyncpa [#allocation3], 1 }
 0x2b2   :  { %380 = vsyncpa [#allocation3 + $0x1], 1 }
 0x2b3   :  { %381 = vsyncpa [#allocation6], 1 }
 0x2b4   :  { %382 = vsyncpa [#allocation4], 1 }
 0x2b5   :  { %384 = vsyncpa [#allocation4 + $0x1], 1 }

</bundles_post_ra>
